<compile_context>
chip_gen: v6e
topology: v6e:2x2x1
jax: 0.10.0
libtpu: 0.0.40
codegen_flags: <defaults>
</compile_context>

<pallas_src>
import warnings
from typing import List

import jax
import jax.numpy as jnp
from jax.experimental import pallas as pl
from jax.experimental.pallas import tpu as pltpu


def _round_up(x: int, m: int) -> int:
    return ((x + m - 1) // m) * m


# ----------------------------------------------------------------------------
# Pallas kernel: y_tile = x_tile @ W_slab + b_slab   (W already (K, N) layout)
# ----------------------------------------------------------------------------
def _linear_kernel(x_ref, w_ref, b_ref, o_ref):
    # x_ref: (tile_m, Kp) bf16    w_ref: (Kp, tile_n) bf16 (resident per N slab)
    # b_ref: (1, tile_n) f32      o_ref: (tile_m, tile_n) out_dtype
    acc = jnp.dot(x_ref[...], w_ref[...], preferred_element_type=jnp.float32)
    o_ref[...] = (acc + b_ref[...]).astype(o_ref.dtype)


# ----------------------------------------------------------------------------
# Per-generation VMEM budget (≈75% of physical, conservative 48 MiB fallback)
# ----------------------------------------------------------------------------
def _vmem_budget_bytes() -> int:
    phys = None
    try:
        info = pltpu.get_tpu_info()
        phys = getattr(info, "vmem_capacity_bytes", None)
    except Exception:
        phys = None
    if not phys:
        phys = 64 << 20  # assume v7x-sized VMEM if we can't query (safe floor)
    return int(phys) * 3 // 4


def _footprint_bytes(tile_m: int, tile_n: int, kp: int, out_bytes: int) -> int:
    # Count the double-buffered pipeline footprint of every operand.
    x_b = 2 * tile_m * kp * 2          # bf16 x tiles
    w_b = 2 * kp * tile_n * 2          # bf16 weight slab (buffered by pipeline)
    y_b = 2 * tile_m * tile_n * out_bytes
    b_b = 2 * tile_n * 4               # f32 bias slab
    slack = (x_b + w_b + y_b + b_b) // 4   # ~25% headroom for compiler scratch
    return x_b + w_b + y_b + b_b + slack


def _select_tiles(m: int, kp: int, np_: int, budget: int, out_bytes: int):
    tm_full = _round_up(min(m, 512), 8)
    tm_cands = [t for t in dict.fromkeys((tm_full, 256, 128, 64, 32, 16, 8))
                if 8 <= t <= tm_full]
    tn_cands = [np_] + [t for t in (4096, 2048, 1024, 512, 256, 128)
                        if t < np_ and np_ % t == 0]

    # Pass 1: prefer a large (>=256-row) M tile; shrink the weight slab first.
    tm_floor = min(256, tm_full)
    for tn in tn_cands:
        for tm in tm_cands:
            if tm < tm_floor:
                break
            if _footprint_bytes(tm, tn, kp, out_bytes) <= budget:
                return tm, tn
    # Pass 2: anything that fits.
    for tn in tn_cands:
        for tm in tm_cands:
            if _footprint_bytes(tm, tn, kp, out_bytes) <= budget:
                return tm, tn
    return 8, 128  # minimal fallback; always fits


# ----------------------------------------------------------------------------
# Pallas-backed linear: x2d (M, K) f32 @ w_p (Kp, Np) bf16 + b_p (1, Np) f32
# ----------------------------------------------------------------------------
def pallas_linear(x2d: jax.Array, w_p: jax.Array, b_p: jax.Array,
                  n_out: int, out_dtype=jnp.float32) -> jax.Array:
    M, K = x2d.shape
    Kp, Np = w_p.shape
    out_bytes = jnp.dtype(out_dtype).itemsize

    budget = _vmem_budget_bytes()
    tile_m, tile_n = _select_tiles(M, Kp, Np, budget, out_bytes)

    Mp = _round_up(M, tile_m)
    grid_m = Mp // tile_m
    grid_n = Np // tile_n

    # Keep both TensorCores busy on v7x (and megacore on v6e) for small M:
    # ensure the 'parallel' grid has >= 2 steps when the output is wide enough.
    if grid_m == 1 and grid_n == 1 and Np >= 256:
        for t in (2048, 1024, 512, 256, 128):
            if t < Np and Np % t == 0:
                tile_n, grid_n = t, Np // t
                break

    # Activations: cast to bf16; pad only if actually needed (K already a
    # multiple of 128 and M tile-aligned => zero-copy pass-through).
    x_bf = x2d.astype(jnp.bfloat16)
    if Mp != M or Kp != K:
        x_bf = jnp.zeros((Mp, Kp), jnp.bfloat16).at[:M, :K].set(x_bf)

    flops = 2 * Mp * Kp * Np
    bytes_accessed = Mp * Kp * 2 + Kp * Np * 2 + Np * 4 + Mp * Np * out_bytes

    y_p = pl.pallas_call(
        _linear_kernel,
        out_shape=jax.ShapeDtypeStruct((Mp, Np), out_dtype),
        # N outer, M inner: each weight slab is DMA'd once while x/y stream.
        grid=(grid_n, grid_m),
        in_specs=[
            pl.BlockSpec((tile_m, Kp), lambda n, m: (m, 0)),
            pl.BlockSpec((Kp, tile_n), lambda n, m: (0, n)),
            pl.BlockSpec((1, tile_n), lambda n, m: (0, n)),
        ],
        out_specs=pl.BlockSpec((tile_m, tile_n), lambda n, m: (m, n)),
        compiler_params=pltpu.CompilerParams(
            dimension_semantics=("parallel", "parallel"),
            vmem_limit_bytes=budget,
        ),
        cost_estimate=pl.CostEstimate(
            flops=flops, transcendentals=0, bytes_accessed=bytes_accessed),
    )(x_bf, w_p, b_p)

    if Mp == M and Np == n_out:
        return y_p
    if Np == n_out:
        return y_p[:M]
    return y_p[:M, :n_out]


# ----------------------------------------------------------------------------
# JAX-side re-implementation of the wrapped module + ModuleWrapper semantics
# ----------------------------------------------------------------------------
class JaxLinearModule:
    """Stands in for the wrapped torch.nn.Linear; forward runs on Pallas."""

    def __init__(self, in_features: int, out_features: int, key: jax.Array):
        kw, kb = jax.random.split(key)
        bound = float(1.0 / jnp.sqrt(in_features))  # torch.nn.Linear init range
        # Stored torch-style as (out, in); transposed ONCE to (in, out) so the
        # kernel never transposes.
        self.weight = jax.random.uniform(
            kw, (out_features, in_features), jnp.float32, minval=-bound, maxval=bound)
        self.bias = jax.random.uniform(
            kb, (out_features,), jnp.float32, minval=-bound, maxval=bound)
        self.weight_kn = jnp.transpose(self.weight)  # (K, N)

        self.K, self.N = in_features, out_features
        Kp, Np = _round_up(self.K, 128), _round_up(self.N, 128)
        self.Kp, self.Np = Kp, Np

        # One-time (hoisted) kernel-layout weight/bias: lane-padded, bf16.
        w_bf = self.weight_kn.astype(jnp.bfloat16)
        if (Kp, Np) != (self.K, self.N):
            self.w_p = jnp.zeros((Kp, Np), jnp.bfloat16).at[:self.K, :self.N].set(w_bf)
            self.b_p = jnp.zeros((1, Np), jnp.float32).at[0, :self.N].set(self.bias)
        else:
            self.w_p = w_bf
            self.b_p = self.bias.reshape(1, self.N)

    def __call__(self, x: jax.Array) -> jax.Array:
        *lead, K = x.shape
        M = 1
        for d in lead:
            M *= d
        x2d = x.reshape(M, K)
        # Small-shape fast path: padding + pallas_call overhead dominates for
        # tiny problems (e.g. hidden=32); plain XLA dot is strictly faster.
        if K < 128 or self.N < 128 or M * K * self.N < (1 << 20):
            y2d = x2d @ self.weight_kn + self.bias
        else:
            y2d = pallas_linear(x2d, self.w_p, self.b_p, self.N,
                                out_dtype=jnp.float32)
        return y2d.reshape(*lead, self.N)


class ModuleWrapper:
    """Pass-through wrapper mirroring pytorch_probing.ModuleWrapper.forward."""

    # TODO(synk): torch's nn.Module attribute registration / __setattr__ routing
    # is Python-object plumbing with no kernel equivalent; only the forward
    # pass-through + reduce-warning semantics are reproduced here.

    def __init__(self, module, member_names: List[str]) -> None:
        object.__setattr__(self, "_module", module)
        object.__setattr__(self, "_member_names", list(member_names))
        object.__setattr__(self, "_reduced", False)

    def forward(self, *args, **kwargs):
        self._check_reduced()
        return self._module(*args, **kwargs)

    __call__ = forward

    def reduce(self):
        object.__setattr__(self, "_reduced", True)
        return self._module

    def __getattr__(self, name):
        return getattr(object.__getattribute__(self, "_module"), name)

    def _check_reduced(self):
        if self._reduced:
            warnings.warn("Model was reduced. Not intercepting results")


# ----------------------------------------------------------------------------
if __name__ == "__main__":
    key = jax.random.PRNGKey(0)
    k1, k2, k3, k4 = jax.random.split(key, 4)

    # ---- Case 1: tiny shape consistent with the module demo (fast path) ----
    batch, seq, hidden = 2, 8, 32
    tiny = JaxLinearModule(hidden, hidden, k1)
    wrapper_tiny = ModuleWrapper(tiny, member_names=[])
    x_small = jax.random.normal(k2, (batch, seq, hidden), dtype=jnp.float32)
    y_small = jax.block_until_ready(wrapper_tiny(x_small))
    y_small_ref = (x_small.reshape(-1, hidden) @ tiny.weight_kn + tiny.bias
                   ).reshape(batch, seq, hidden)
    assert y_small.shape == (batch, seq, hidden)
    assert jnp.allclose(y_small, y_small_ref, atol=1e-5, rtol=1e-5)

    # ---- Case 2: lane-aligned small shape that exercises the Pallas path ----
    batch2, seq2, hidden2 = 2, 64, 256
    mod = JaxLinearModule(hidden2, hidden2, k3)
    wrapper = ModuleWrapper(mod, member_names=[])
    x = jax.random.normal(k4, (batch2, seq2, hidden2), dtype=jnp.float32)
    y = jax.block_until_ready(wrapper(x))  # forward: pass-through -> Pallas

    x2d = x.reshape(-1, hidden2)
    y_ref_bf16 = (jnp.dot(x2d.astype(jnp.bfloat16),
                          mod.weight_kn.astype(jnp.bfloat16),
                          preferred_element_type=jnp.float32) + mod.bias)
    y_ref_f32 = x2d @ mod.weight_kn + mod.bias

    assert y.shape == (batch2, seq2, hidden2)
    y2d = y.reshape(-1, hidden2)
    assert jnp.allclose(y2d, y_ref_bf16, atol=2e-3, rtol=2e-3), float(
        jnp.max(jnp.abs(y2d - y_ref_bf16)))
    assert jnp.allclose(y2d, y_ref_f32, atol=5e-2, rtol=5e-2)

    # reduce() semantics: returns the wrapped module; forward then only warns.
    reduced = wrapper.reduce()
    assert reduced is mod

    print("KERNEL_OK")
</pallas_src>

<mosaic_0001>
module attributes {stable_mosaic.version = 11 : i64} {
  func.func @_linear_kernel(%arg0: i32, %arg1: i32, %arg2: memref<128x256xbf16, #tpu.memory_space<vmem>>, %arg3: memref<256x128xbf16, #tpu.memory_space<vmem>>, %arg4: memref<1x128xf32, #tpu.memory_space<vmem>>, %arg5: memref<128x128xf32, #tpu.memory_space<vmem>>) attributes {dimension_semantics = [#tpu.dimension_semantics<parallel>, #tpu.dimension_semantics<parallel>], iteration_bounds = array<i64: 2, 1>, scalar_prefetch = 0 : i64, scratch_operands = 0 : i64, tpu.core_type = #tpu.core_type<tc>, window_params = [{transform_indices = @transform_0, window_bounds = array<i64: 128, 256>}, {transform_indices = @transform_1, window_bounds = array<i64: 256, 128>}, {transform_indices = @transform_2, window_bounds = array<i64: 1, 128>}, {transform_indices = @transform_3, window_bounds = array<i64: 128, 128>}]} {
    %c0 = arith.constant 0 : index
    %c0_0 = arith.constant 0 : index
    %0 = vector.load %arg2[%c0, %c0_0] : memref<128x256xbf16, #tpu.memory_space<vmem>>, vector<128x256xbf16>
    %c0_1 = arith.constant 0 : index
    %c0_2 = arith.constant 0 : index
    %1 = vector.load %arg3[%c0_1, %c0_2] : memref<256x128xbf16, #tpu.memory_space<vmem>>, vector<256x128xbf16>
    %cst = arith.constant dense<0.000000e+00> : vector<128x128xf32>
    %2 = tpu.matmul %0, %1, %cst {dimension_numbers = #tpu.dot_dimension_numbers<[1], [0], [0], [1], [0, 0, 1, 1], [], []>} : vector<128x256xbf16>, vector<256x128xbf16>, vector<128x128xf32> -> vector<128x128xf32>
    %c0_3 = arith.constant 0 : index
    %c0_4 = arith.constant 0 : index
    %3 = vector.load %arg4[%c0_3, %c0_4] : memref<1x128xf32, #tpu.memory_space<vmem>>, vector<1x128xf32>
    %4 = vector.broadcast %3 : vector<1x128xf32> to vector<128x128xf32>
    %5 = arith.addf %2, %4 : vector<128x128xf32>
    %c0_5 = arith.constant 0 : index
    %c0_6 = arith.constant 0 : index
    %6 = vector.load %arg5[%c0_5, %c0_6] : memref<128x128xf32, #tpu.memory_space<vmem>>, vector<128x128xf32>
    tpu.vector_store %arg5[%c0_5, %c0_6], %5 {strides = array<i32>} : memref<128x128xf32, #tpu.memory_space<vmem>>, vector<128x128xf32>,
    return
  }
  func.func @transform_0(%arg0: i32, %arg1: i32) -> (i32, i32) {
    %c0_i32 = arith.constant 0 : i32
    %c0_i32_0 = arith.constant 0 : i32
    return %arg1, %c0_i32 : i32, i32
  }
  func.func @transform_1(%arg0: i32, %arg1: i32) -> (i32, i32) {
    %c0_i32 = arith.constant 0 : i32
    %c0_i32_0 = arith.constant 0 : i32
    return %c0_i32, %arg0 : i32, i32
  }
  func.func @transform_2(%arg0: i32, %arg1: i32) -> (i32, i32) {
    %c0_i32 = arith.constant 0 : i32
    %c0_i32_0 = arith.constant 0 : i32
    return %c0_i32, %arg0 : i32, i32
  }
  func.func @transform_3(%arg0: i32, %arg1: i32) -> (i32, i32) {
    %c0_i32 = arith.constant 0 : i32
    return %arg1, %arg0 : i32, i32
  }
}

</mosaic_0001>

<bundles_post_ra>
// kernel: tpu_custom_call.1
= control target key start
LH: loop header
LB: loop body
LE: loop exit
PB: predicated region body
PF: predicated region fallthrough
CT: control target
= control target key end

     0   :  { %8 = vsyncpa [#allocation3], 0  ;;  %s1369_s0 = inlined_call_operand.hbm [shape: bf16[128,256], index: 0, kind: input, shape index: {}]   ;;  %s1370_s1 = inlined_call_operand.hbm [shape: bf16[256,256], index: 1, kind: input, shape index: {}]   ;;  %s1371_s2 = inlined_call_operand.vmem [shape: f32[1,256], index: 2, kind: input, shape index: {}]   ;;  %s1372_s3 = inlined_call_operand.hbm [shape: f32[128,256], index: 3, kind: output, shape index: {}]  }
   0x1   :  { %9 = vsyncpa [#allocation6], 0 }
   0x2   :  { %11 = vsyncpa [#allocation6 + $0x1], 0 }
   0x3   :  { %12 = vsyncpa [#allocation4], 0 }
   0x4   :  { %14 = vsyncpa [#allocation4 + $0x1], 0  ;;  %s1127_s12 = smov 0   ;;  %s1129_s13 = smov 0  }
   0x5   :  { %s1131_s14 = smov 0   ;;  %s1133_s15 = smov 0  }
   0x6   :  { %s1135_s16 = smov 0   ;;  %s1137_s17 = smov 0  }
   0x7 LB: > { %1378 = sst [smem:[#allocation11_spill]] %s1095_s17  ;;  %s709_s18 = sadd.s32 4294967295, %s1095_s17   ;;  %s1095_s17 = sphi %s1137_s17, %s20_s17   ;;  %s1091_s16 = sphi %s1135_s16, %s1398_s16   ;;  %s1087_s15 = sphi %s1133_s15, %s1397_s15   ;;  %s1083_s14 = sphi %s1131_s14, %s1396_s14   ;;  %s1079_s13 = sphi %s1129_s13, %s1395_s13   ;;  %s1075_s12 = sphi %s1127_s12, %s1394_s12  }
   0x8   : > { %s710_s19 = sadd.s32 4294967294, %s1095_s17   ;;  %p72_p0 = scmp.ne.s32.totalorder %s1083_s14, %s1079_s13 }
   0x9   : > { %p73_p1 = scmp.eq.s32.totalorder %s1095_s17, 0  ;;  %p78_p2 = scmp.ne.s32.totalorder %s1079_s13, %s1075_s12 }
   0xa   : > { %p1164_p3 = scmp.eq.s32.totalorder %s709_s18, 0  ;;  %p130_p5 = scmp.eq.s32.totalorder %s709_s18, 1 }
   0xb   : > { %p1168_p4 = por %p73_p1, %p72_p0  ;;  %p136_p7 = scmp.eq.s32.totalorder %s710_s19, 1 }
   0xc   : > { %p1174_p6 = por %p1164_p3, %p78_p2  ;;  %p1178_p8 = por %p130_p5, %p72_p0 }
   0xd   : > { %p711_p9 = scmp.ge.s32.totalorder %s1095_s17, 1  ;;  %p1183_p10 = por %p136_p7, %p78_p2 }
   0xe   : > { %s1381_s22 = scalar_select %p1174_p6, 1, 0 }
   0xf   : > { %s1382_s23 = scalar_select %p1178_p8, 1, 0 }
  0x10   : > { %s1383_s24 = scalar_select %p1183_p10, 1, 0 }
  0x11   : > { %p143_p11 = scmp.lt.s32.totalorder %s1095_s17, 3  ;;  %s1097_s26 = smov [#allocation2]  }
  0x12   : > { %1384 = sst [smem:[#allocation12_spill]] %s1383_s24  ;;  %s159_s27 = sshll.u32 %s1097_s26, 4  ;;  %s160_s27 = int_to_ptr.vmem [resolvable:$true] %s159_s27 }
  0x13   : > { %p1188_p12 = pnand %p711_p9, %p143_p11  ;;  %p858_p1 = scmp.lt.s32.totalorder %s1095_s17, 2 }
  0x14   : > { %s32_s30 = sadd.s32 1, %s1091_s16  ;;  %s968_s4 = scalar_lea.vmem %s160_s27, 2048 }
  0x15   : > { %p845_p13 = pneg %p1188_p12  ;;  %p1204_p2 = pnand %p858_p1, %p1168_p4 }
  0x16   : > { %p969_p9 = scmp.ne.s32.totalorder %s160_s27, %s968_s4  ;;  %p976_p0 = scmp.lt.s32.totalorder %s160_s27, %s160_s27 }
  0x17   : > { %p1198_p5 = pnand %p845_p13, %p1164_p3  ;;  %p977_p8 = scmp.lt.s32.totalorder %s968_s4, %s968_s4 }
  0x19   : > { %p959_p7 = pneg %p1198_p5  ;;  %p978_p6 = por %p977_p8, %p976_p0 }
  0x1b   : > { %p971_p11 = pnand %p969_p9, %p959_p7 }
  0x1d   : > { %p972_p10 = pneg %p971_p11 }
  0x1f   : > { %p979_p13 = pnand %p978_p6, %p972_p10 }
  0x21   : > { %982 = shalt.err (!%p979_p13)
}
  0x22   : > { %s1098_s5 = smov 128   ;;  %s1099_s6 = smov 8  }
  0x23   : > { %848 = dma.hbm_to_vmem [thread:$0]  (!%p1198_p5), %s1369_s0, 2048, %s160_s27, [#allocation3], %s1098_s5, %s1098_s5, %s1099_s6  }
  0x24   : > { %p34_p4 = scmp.ge.s32.totalorder %s32_s30, 2  ;;  %s65_s9 = sadd.s32 1, %s1083_s14 }
  0x25   : > { %s173_s10 = sand.u32 1, %s1083_s14   ;;  %s715_s19 = sshll.u32 %s1091_s16, 6 }
  0x26   : > { %s1400_s30 = smov (%p34_p4, %s32_s30), 0  ;;  %s714_s11 = sshll.u32 %s173_s10, 7 }
  0x27   : > { %s62_s18 = ssub.s32 %s1091_s16, %s1400_s30  ;;  %s182_s28 = scalar_lea.hbm %s1370_s1, %s715_s19 }
  0x28   : > { %p63_p6 = scmp.eq.s32.totalorder %s62_s18, 0  ;;  %s177_s4 = scalar_lea.vmem [#allocation5], %s714_s11 }
  0x29   : > { %s183_s17 = sshll.u32 %s177_s4, 4  ;;  %s174_s27 = scalar_lea.sflag [#allocation6], %s173_s10  ;;  %s184_s17 = int_to_ptr.vmem [resolvable:$true] %s183_s17 }
  0x2a   : > { %s1229_s24 = scalar_select %p63_p6, %s1083_s14, %s65_s9  }
  0x2b   : > { %p985_p8 = pneg %p1204_p2  ;;  %s996_s6 = scalar_lea.vmem %s184_s17, 2048 }
  0x2c   : > { %p997_p10 = scmp.ne.s32.totalorder %s184_s17, %s996_s6  ;;  %s1100_s7 = smov [#allocation5]  }
  0x2d   : > { %s1001_s8 = sshll.u32 %s1100_s7, 4  ;;  %s1002_s8 = int_to_ptr.vmem [resolvable:$false] %s1001_s8 }
  0x2e   : > { %p999_p0 = pnand %p997_p10, %p985_p8  ;;  %s1003_s18 = scalar_lea.vmem %s1002_s8, 4096 }
  0x2f   : > { %p1004_p5 = scmp.lt.s32.totalorder %s184_s17, %s1002_s8  ;;  %p1005_p7 = scmp.lt.s32.totalorder %s1003_s18, %s996_s6 }
  0x30   : > { %p1000_p1 = pneg %p999_p0 }
  0x31   : > { %p1006_p9 = por %p1005_p7, %p1004_p5 }
  0x33   : > { %p1007_p11 = pnand %p1006_p9, %p1000_p1 }
  0x35   : > { %1010 = shalt.err (!%p1007_p11)
}
  0x36   : > { %s1101_s11 = smov 64   ;;  %s1102_s9 = smov 4  }
  0x37   : > { %852 = dma.hbm_to_vmem [thread:$0]  (!%p1204_p2), %s182_s28, 2048, %s184_s17, %s174_s27, %s1098_s5, %s1101_s11, %s1102_s9  }
  0x38   : > { %201 = sbr.rel (%p1188_p12) target bundleno = 341 (0x155), region = 32 }
  0x3d   : > { %1062 = dma.done.wait (%p1164_p3), [#allocation3], 2048  }
  0x3e   : > { %1064 = vsyncadd (%p1164_p3), [#allocation3], 4294965248  ;;  %s1243_s10 = sand.u32 1, %s1079_s13   ;;  %p1388_p2 = scmp.ne.s32.totalorder %s1381_s22, 0 }
  0x3f   : > { %s718_s19 = sshll.u32 %s1243_s10, 7  ;;  %s208_s29 = scalar_lea.sflag [#allocation6], %s1243_s10 }
  0x40   : > { %s1249_s17 = scalar_lea.vmem [#allocation5], %s718_s19 }
  0x41   : > { %1066 = dma.done.wait (%p1388_p2), %s208_s29, 2048  }
  0x42   : > { %1068 = vsyncadd (%p1388_p2), %s208_s29, 4294965248  ;;  %v917_v0 = vld [vmem:[%s1249_s17 + $0x78] sm:$0xff]   ;;  %v919_v2 = vld [vmem:[%s1249_s17 + $0x70] sm:$0xff]   ;;  %p238_p3 = scmp.lt.s32.totalorder %s1087_s15, 1  ;;  %s1282_s21 = scalar_lea.vmem [#allocation7], %s718_s19 }
  0x43   : > { %v918_v1 = vld [vmem:[%s1249_s17 + $0x38] sm:$0xff]   ;;  %757 = vmatprep.subr.bf16.mxu0 %v917_v0  ;;  %821 = vmatprep.subr.bf16.mxu1 %v917_v0  ;;  %v920_v3 = vld [vmem:[%s1249_s17 + $0x30] sm:$0xff]   ;;  %v921_v4 = vld [vmem:[%s1249_s17 + $0x68] sm:$0xff]   ;;  %s754_s26 = sshll.u32 %s1087_s15, 7  ;;  %s603_s28 = sshll.u32 %s1282_s21, 4  ;;  %s1317_s28 = int_to_ptr.vmem [resolvable:$true] %s603_s28 }
  0x44   : > { %758 = vmatpush3.bf16.msra.mxu0 %v918_v1  ;;  %829 = vmatpush3.bf16.msra.mxu1 %v918_v1  ;;  %v922_v5 = vld [vmem:[%s1249_s17 + $0x28] sm:$0xff]   ;;  %v923_v6 = vld [vmem:[%s1249_s17 + $0x60] sm:$0xff]   ;;  %v925_v8 = vld [vmem:[%s1249_s17 + $0x58] sm:$0xff]   ;;  %s239_s20 = scalar_select %p238_p3, %s1087_s15, 1 }
  0x45   : > { %759 = vmatprep.subr.bf16.mxu0 %v919_v2  ;;  %822 = vmatprep.subr.bf16.mxu1 %v919_v2  ;;  %v924_v7 = vld [vmem:[%s1249_s17 + $0x20] sm:$0xff]   ;;  %v926_v9 = vld [vmem:[%s1249_s17 + $0x18] sm:$0xff]   ;;  %v927_v10 = vld [vmem:[%s1249_s17 + $0x50] sm:$0xff]   ;;  %s1315_s6 = scalar_lea.hbm %s1372_s3, %s754_s26  ;;  %s588_s15 = scalar_lea.sflag [#allocation4], %s1243_s10 }
  0x46   : > { %v935_v11 = vld [vmem:[#allocation2 + $0x4] ss:$8 sps:$4 sm:$0xff]   ;;  %v928_v13 = vld [vmem:[%s1249_s17 + $0x10] sm:$0xff]   ;;  %v933_v18 = vld [vmem:[#allocation2] ss:$8 sps:$4 sm:$0xff]   ;;  %s240_s5 = scalar_lea.vmem %s1371_s2, %s239_s20  ;;  %s1011_s7 = scalar_lea.vmem %s1317_s28, 2048 }
  0x47   : > { %v938_v12 = vld [vmem:[#allocation2 + $0x44] ss:$8 sps:$4 sm:$0xff]   ;;  %506 = vmatprep.mubr.bf16.mxu0 %v935_v11  ;;  %v936_v19 = vld [vmem:[#allocation2 + $0x40] ss:$8 sps:$4 sm:$0xff]   ;;  %v939_v20 = vld [vmem:[#allocation2 + $0x14] ss:$8 sps:$4 sm:$0xff]   ;;  %p1012_p12 = scmp.ne.s32.totalorder %s1317_s28, %s1011_s7 }
  0x48   : > { %760 = vmatpush3.bf16.msra.mxu0 %v920_v3  ;;  %830 = vmatpush3.bf16.msra.mxu1 %v920_v3  ;;  %v929_v14 = vld [vmem:[%s1249_s17 + $0x48] sm:$0xff]   ;;  %v931_v16 = vld [vmem:[%s1249_s17 + $0x40] sm:$0xff]   ;;  %v941_v21 = vld [vmem:[#allocation2 + $0x54] ss:$8 sps:$4 sm:$0xff]   ;;  %p1389_p13 = scmp.ne.s32.totalorder %s1382_s23, 0  ;;  %s1103_s8 = smov [#allocation7]  }
  0x49   : > { %761 = vmatprep.subr.bf16.mxu0 %v921_v4  ;;  %823 = vmatprep.subr.bf16.mxu1 %v921_v4  ;;  %v930_v15 = vld [vmem:[%s1249_s17 + $0x8] sm:$0xff]   ;;  %v932_v17 = vld [vmem:[%s1249_s17] sm:$0xff]   ;;  %v943_v22 = vld [vmem:[#allocation2 + $0x10] ss:$8 sps:$4 sm:$0xff]   ;;  %s1015_s18 = sshll.u32 %s1103_s8, 4  ;;  %s1016_s18 = int_to_ptr.vmem [resolvable:$false] %s1015_s18 }
  0x4a   : > { %538 = vmatprep.mubr.bf16.mxu1 %v938_v12  ;;  %v944_v23 = vld [vmem:[#allocation2 + $0x50] ss:$8 sps:$4 sm:$0xff]   ;;  %v945_v24 = vld [vmem:[#allocation2 + $0x24] ss:$8 sps:$4 sm:$0xff]   ;;  %v949_v26 = vld [vmem:[#allocation2 + $0x20] ss:$8 sps:$4 sm:$0xff]   ;;  %p1013_p4 = pnand %p1012_p12, %p1389_p13  ;;  %p1018_p8 = scmp.lt.s32.totalorder %s1317_s28, %s1016_s18 }
  0x4b   : > { %v947_v25 = vld [vmem:[#allocation2 + $0x64] ss:$8 sps:$4 sm:$0xff]   ;;  %v950_v27 = vld [vmem:[#allocation2 + $0x60] ss:$8 sps:$4 sm:$0xff]   ;;  %v951_v28 = vld [vmem:[#allocation2 + $0x34] ss:$8 sps:$4 sm:$0xff]  }
  0x4c   : > { %762 = vmatpush3.bf16.msra.mxu0 %v922_v5  ;;  %831 = vmatpush3.bf16.msra.mxu1 %v922_v5  ;;  %v953_v29 = vld [vmem:[#allocation2 + $0x74] ss:$8 sps:$4 sm:$0xff]   ;;  %v955_v30 = vld [vmem:[#allocation2 + $0x30] ss:$8 sps:$4 sm:$0xff]   ;;  %v1276_v34 = vld [vmem:[%s240_s5] ss:$0 sm:$0xff]  ;;  %p1014_p6 = pneg %p1013_p4 }
  0x4d   : > { %763 = vmatprep.subr.bf16.mxu0 %v923_v6  ;;  %824 = vmatprep.subr.bf16.mxu1 %v923_v6  ;;  %v956_v31 = vld [vmem:[#allocation2 + $0x70] ss:$8 sps:$4 sm:$0xff]   ;;  %s1017_s11 = scalar_lea.vmem %s1016_s18, 4096 }
  0x4e   : > { %p1019_p10 = scmp.lt.s32.totalorder %s1017_s11, %s1011_s7 }
  0x50   : > { %764 = vmatpush3.bf16.msra.mxu0 %v924_v7  ;;  %832 = vmatpush3.bf16.msra.mxu1 %v924_v7  ;;  %p1020_p0 = por %p1019_p10, %p1018_p8 }
  0x51   : > { %765 = vmatprep.subr.bf16.mxu0 %v925_v8  ;;  %825 = vmatprep.subr.bf16.mxu1 %v925_v8 }
  0x52   : > { %p1021_p1 = pnand %p1020_p0, %p1014_p6 }
  0x54   : > { %766 = vmatpush3.bf16.msra.mxu0 %v926_v9  ;;  %833 = vmatpush3.bf16.msra.mxu1 %v926_v9 }
  0x55   : > { %767 = vmatprep.subr.bf16.mxu0 %v927_v10  ;;  %826 = vmatprep.subr.bf16.mxu1 %v927_v10 }
  0x58   : > { %768 = vmatpush3.bf16.msra.mxu0 %v928_v13  ;;  %834 = vmatpush3.bf16.msra.mxu1 %v928_v13 }
  0x59   : > { %769 = vmatprep.subr.bf16.mxu0 %v929_v14  ;;  %827 = vmatprep.subr.bf16.mxu1 %v929_v14 }
  0x5c   : > { %770 = vmatpush3.bf16.msra.mxu0 %v930_v15  ;;  %835 = vmatpush3.bf16.msra.mxu1 %v930_v15 }
  0x5d   : > { %771 = vmatprep.subr.bf16.mxu0 %v931_v16  ;;  %828 = vmatprep.subr.bf16.mxu1 %v931_v16 }
  0x60   : > { %772 = vmatpush3.bf16.msra.mxu0 %v932_v17  ;;  %836 = vmatpush3.bf16.msra.mxu1 %v932_v17 }
  0x63   : > { %507 = vmatmul.mubr.bf16.vlgmr.msra.gmra.mxu0 %v933_v18  ;;  %539 = vmatmul.mubr.bf16.vlgmr.msra.gmra.mxu1 %v936_v19 }
  0x64   : > { %514 = vmatprep.mubr.bf16.mxu0 %v939_v20  ;;  %546 = vmatprep.mubr.bf16.mxu1 %v941_v21 }
  0x6b   : > { %515 = vmatmul.mubr.bf16.gmra.mxu0 %v943_v22  ;;  %547 = vmatmul.mubr.bf16.gmra.mxu1 %v944_v23 }
  0x6c   : > { %522 = vmatprep.mubr.bf16.mxu0 %v945_v24  ;;  %554 = vmatprep.mubr.bf16.mxu1 %v947_v25 }
  0x73   : > { %523 = vmatmul.mubr.bf16.gmra.mxu0 %v949_v26  ;;  %555 = vmatmul.mubr.bf16.gmra.mxu1 %v950_v27 }
  0x74   : > { %530 = vmatprep.mubr.bf16.mxu0 %v951_v28  ;;  %562 = vmatprep.mubr.bf16.mxu1 %v953_v29 }
  0x7b   : > { %531 = vmatmul.mubr.bf16.gmra.mxu0 %v955_v30  ;;  %563 = vmatmul.mubr.bf16.gmra.mxu1 %v956_v31 }
 0x123   : > { %v773_v32 = vpop.f32.mrf.mxu0  ;;  %v797_v33 = vpop.f32.mrf.mxu1 }
 0x125   : > { %v774_v35 = vpop.f32.mrf.mxu0  ;;  %v798_v36 = vpop.f32.mrf.mxu1 }
 0x126   : > { %v775_v37 = vadd.f32 %v774_v35, %v773_v32  ;;  %v799_v38 = vadd.f32 %v798_v36, %v797_v33 }
 0x127   : > { %v776_v39 = vpop.f32.mrf.mxu0  ;;  %v800_v40 = vpop.f32.mrf.mxu1 }
 0x128   : > { %v509_v41 = vadd.f32 %v775_v37, %v1276_v34  ;;  %v541_v42 = vadd.f32 %v799_v38, %v1276_v34 }
 0x129   : > { %v777_v43 = vpop.f32.mrf.mxu0  ;;  %v801_v44 = vpop.f32.mrf.mxu1 }
 0x12a   : > { %571 = vst [vmem:[%s1282_s21] sm:$0xff] %v509_v41  ;;  %579 = vst [vmem:[%s1282_s21 + $0x40] sm:$0xff] %v541_v42  ;;  %v778_v45 = vadd.f32 %v777_v43, %v776_v39  ;;  %v802_v46 = vadd.f32 %v801_v44, %v800_v40 }
 0x12b   : > { %v779_v47 = vpop.f32.mrf.mxu0  ;;  %v803_v48 = vpop.f32.mrf.mxu1 }
 0x12c   : > { %v512_v49 = vadd.f32 %v778_v45, %v1276_v34  ;;  %v544_v50 = vadd.f32 %v802_v46, %v1276_v34 }
 0x12d   : > { %v780_v51 = vpop.f32.mrf.mxu0  ;;  %v804_v52 = vpop.f32.mrf.mxu1 }
 0x12e   : > { %572 = vst [vmem:[%s1282_s21 + $0x8] sm:$0xff] %v512_v49  ;;  %580 = vst [vmem:[%s1282_s21 + $0x48] sm:$0xff] %v544_v50  ;;  %v781_v53 = vadd.f32 %v780_v51, %v779_v47  ;;  %v805_v54 = vadd.f32 %v804_v52, %v803_v48 }
 0x12f   : > { %v782_v55 = vpop.f32.mrf.mxu0  ;;  %v806_v56 = vpop.f32.mrf.mxu1 }
 0x130   : > { %v517_v57 = vadd.f32 %v781_v53, %v1276_v34  ;;  %v549_v58 = vadd.f32 %v805_v54, %v1276_v34 }
 0x131   : > { %v783_v59 = vpop.f32.mrf.mxu0  ;;  %v807_v60 = vpop.f32.mrf.mxu1 }
 0x132   : > { %573 = vst [vmem:[%s1282_s21 + $0x10] sm:$0xff] %v517_v57  ;;  %581 = vst [vmem:[%s1282_s21 + $0x50] sm:$0xff] %v549_v58  ;;  %v784_v61 = vadd.f32 %v783_v59, %v782_v55  ;;  %v808_v62 = vadd.f32 %v807_v60, %v806_v56 }
 0x133   : > { %v785_v63 = vpop.f32.mrf.mxu0  ;;  %v809_v0 = vpop.f32.mrf.mxu1 }
 0x134   : > { %v520_v1 = vadd.f32 %v784_v61, %v1276_v34  ;;  %v552_v2 = vadd.f32 %v808_v62, %v1276_v34 }
 0x135   : > { %v786_v3 = vpop.f32.mrf.mxu0  ;;  %v810_v4 = vpop.f32.mrf.mxu1 }
 0x136   : > { %574 = vst [vmem:[%s1282_s21 + $0x18] sm:$0xff] %v520_v1  ;;  %582 = vst [vmem:[%s1282_s21 + $0x58] sm:$0xff] %v552_v2  ;;  %v787_v5 = vadd.f32 %v786_v3, %v785_v63  ;;  %v811_v6 = vadd.f32 %v810_v4, %v809_v0 }
 0x137   : > { %v788_v7 = vpop.f32.mrf.mxu0  ;;  %v812_v8 = vpop.f32.mrf.mxu1 }
 0x138   : > { %v525_v9 = vadd.f32 %v787_v5, %v1276_v34  ;;  %v557_v10 = vadd.f32 %v811_v6, %v1276_v34 }
 0x139   : > { %v789_v11 = vpop.f32.mrf.mxu0  ;;  %v813_v12 = vpop.f32.mrf.mxu1 }
 0x13a   : > { %575 = vst [vmem:[%s1282_s21 + $0x20] sm:$0xff] %v525_v9  ;;  %583 = vst [vmem:[%s1282_s21 + $0x60] sm:$0xff] %v557_v10  ;;  %v790_v13 = vadd.f32 %v789_v11, %v788_v7  ;;  %v814_v14 = vadd.f32 %v813_v12, %v812_v8 }
 0x13b   : > { %v791_v15 = vpop.f32.mrf.mxu0  ;;  %v815_v16 = vpop.f32.mrf.mxu1 }
 0x13c   : > { %v528_v17 = vadd.f32 %v790_v13, %v1276_v34  ;;  %v560_v18 = vadd.f32 %v814_v14, %v1276_v34 }
 0x13d   : > { %v792_v19 = vpop.f32.mrf.mxu0  ;;  %v816_v20 = vpop.f32.mrf.mxu1 }
 0x13e   : > { %576 = vst [vmem:[%s1282_s21 + $0x28] sm:$0xff] %v528_v17  ;;  %584 = vst [vmem:[%s1282_s21 + $0x68] sm:$0xff] %v560_v18  ;;  %v793_v21 = vadd.f32 %v792_v19, %v791_v15  ;;  %v817_v22 = vadd.f32 %v816_v20, %v815_v16 }
 0x13f   : > { %v794_v23 = vpop.f32.mrf.mxu0  ;;  %v818_v24 = vpop.f32.mrf.mxu1 }
 0x140   : > { %v533_v25 = vadd.f32 %v793_v21, %v1276_v34  ;;  %v565_v26 = vadd.f32 %v817_v22, %v1276_v34 }
 0x141   : > { %v795_v27 = vpop.f32.mrf.mxu0  ;;  %v819_v28 = vpop.f32.mrf.mxu1 }
 0x142   : > { %577 = vst [vmem:[%s1282_s21 + $0x30] sm:$0xff] %v533_v25  ;;  %585 = vst [vmem:[%s1282_s21 + $0x70] sm:$0xff] %v565_v26  ;;  %v796_v29 = vadd.f32 %v795_v27, %v794_v23  ;;  %v820_v30 = vadd.f32 %v819_v28, %v818_v24 }
 0x144   : > { %v536_v31 = vadd.f32 %v796_v29, %v1276_v34  ;;  %v568_v32 = vadd.f32 %v820_v30, %v1276_v34 }
 0x146   : > { %578 = vst [vmem:[%s1282_s21 + $0x38] sm:$0xff] %v536_v31  ;;  %586 = vst [vmem:[%s1282_s21 + $0x78] sm:$0xff] %v568_v32 }
 0x147   : > { %1024 = shalt.err (!%p1021_p1)
}
 0x148   : > { %s1025_s9 = scalar_lea.hbm %s1315_s6, 2048  ;;  %s1029_s17 = scalar_lea.hbm %s1372_s3, 4096 }
 0x149   : > { %p1026_p5 = scmp.ne.s32.totalorder %s1315_s6, %s1025_s9  ;;  %p1030_p11 = scmp.lt.s32.totalorder %s1315_s6, %s1372_s3 }
 0x14a   : > { %p1031_p2 = scmp.lt.s32.totalorder %s1029_s17, %s1025_s9 }
 0x14b   : > { %p1027_p7 = pnand %p1026_p5, %p1389_p13 }
 0x14c   : > { %p1032_p3 = por %p1031_p2, %p1030_p11 }
 0x14d   : > { %p1028_p9 = pneg %p1027_p7 }
 0x14f   : > { %p1033_p12 = pnand %p1032_p3, %p1028_p9 }
 0x151   : > { %1036 = shalt.err (!%p1033_p12)
}
 0x152   : > { %s1104_s25 = smov 128   ;;  %s1105_s5 = smov 256  }
 0x153   : > { %s1106_s21 = smov 8  }
 0x154   : > { %843 = dma.vmem_to_hbm [thread:$0]  (%p1389_p13), %s1317_s28, 2048, %s1315_s6, %s588_s15, %s1104_s25, %s1105_s5, %s1106_s21  }
 0x155 PF: > { %s1390_s26 = sld [smem:[#allocation12_spill]]  ;;  %s618_s27 = sand.u32 1, %s1075_s12  }
 0x156   : > { %s1391_s4 = sld [smem:[#allocation11_spill]]  ;;  %s619_s7 = scalar_lea.sflag [#allocation4], %s618_s27 }
 0x15b   : > { %p1392_p4 = scmp.ne.s32.totalorder %s1390_s26, 0 }
 0x15c   : > { %p1393_p6 = scmp.ge.s32.totalorder %s1391_s4, 2 }
 0x15e   : > { %p854_p8 = pnand %p1393_p6, %p1392_p4 }
 0x160   : > { %p855_p10 = pneg %p854_p8 }
 0x162   : > { %1070 = dma.done.wait (%p855_p10), %s619_s7, 2048  }
 0x163   : > { %1072 = vsyncadd (%p855_p10), %s619_s7, 4294965248  ;;  %s20_s17 = sadd.s32 1, %s1391_s4   ;;  %s1394_s12 = smov %s1079_s13 }
 0x164   : > { %p17_p0 = scmp.ge.s32.totalorder %s20_s17, 4   ;;  %s1395_s13 = smov %s1083_s14 }
 0x165   : > { %s1396_s14 = smov %s1229_s24  ;;  %s1397_s15 = smov %s1091_s16 }
 0x166   : > { %s1398_s16 = smov %s1400_s30  ;;  %19 = sbr.rel (!%p17_p0) target bundleno = 7 (0x7), region = 86 }
 0x16b   :  { %624 = vsyncpa [#allocation3], 1 }
 0x16c   :  { %626 = vsyncpa [#allocation3 + $0x1], 1 }
 0x16d   :  { %627 = vsyncpa [#allocation6], 1 }
 0x16e   :  { %629 = vsyncpa [#allocation6 + $0x1], 1 }
 0x16f   :  { %630 = vsyncpa [#allocation4], 1 }
 0x170   :  { %632 = vsyncpa [#allocation4 + $0x1], 1 }

</bundles_post_ra>
